<compile_context>
chip_gen: v5e
topology: v5e:2x2
jax: 0.10.0
libtpu: 0.0.40
codegen_flags: <defaults>
</compile_context>

<pallas_src>
import functools

import jax
import jax.numpy as jnp
from jax.experimental import pallas as pl
from jax.experimental.pallas import tpu as pltpu

BN_EPS = 1e-5


# --------------------------------------------------------------------------------------
# Fused kernel: the full MLP forward in one kernel body.
#   refs = (x, [w0, b0, g0, beta0], ..., [w_{L-2}, b_{L-2}, g_{L-2}, beta_{L-2}],
#           w_{L-1}, b_{L-1}, out)
# Weights are bf16; everything else f32. n_valid / num_layers are static (closed over).
# --------------------------------------------------------------------------------------
def _fused_mlp_kernel(n_valid, num_layers, *refs):
    x_ref = refs[0]
    out_ref = refs[-1]
    layer_refs = refs[1:-1]

    h = x_ref[...].astype(jnp.float32)            # (B_pad, D_pad), f32
    b_pad = h.shape[0]

    # Mask for padded batch rows so BN statistics only see the true batch.
    row_ids = jax.lax.broadcasted_iota(jnp.int32, (b_pad, 1), 0)
    mask = (row_ids < n_valid).astype(jnp.float32)
    inv_n = 1.0 / float(n_valid)

    idx = 0
    for _ in range(num_layers - 1):
        w_ref, b_ref, g_ref, beta_ref = layer_refs[idx:idx + 4]
        idx += 4

        # Linear: bf16 x bf16 -> f32 accumulation on the MXU.
        y = jnp.dot(h.astype(jnp.bfloat16), w_ref[...],
                    preferred_element_type=jnp.float32)
        y = y + b_ref[...]

        # BatchNorm1d (training mode), single-pass masked stats, biased variance.
        ym = y * mask
        s1 = jnp.sum(ym, axis=0, keepdims=True)          # sum over valid rows
        s2 = jnp.sum(ym * y, axis=0, keepdims=True)      # sum of squares over valid rows
        mean = s1 * inv_n
        var = jnp.maximum(s2 * inv_n - mean * mean, 0.0)
        y_hat = (y - mean) * jax.lax.rsqrt(var + BN_EPS)
        y_hat = y_hat * g_ref[...] + beta_ref[...]

        # ReLU
        h = jnp.maximum(y_hat, 0.0)

    # Final Linear (no BN / ReLU).
    w_ref, b_ref = layer_refs[idx:idx + 2]
    y = jnp.dot(h.astype(jnp.bfloat16), w_ref[...],
                preferred_element_type=jnp.float32)
    out_ref[...] = (y + b_ref[...]).astype(out_ref.dtype)


# --------------------------------------------------------------------------------------
# Host-side wrapper: pad to lane/sublane-friendly shapes, build input list, one call.
# --------------------------------------------------------------------------------------
def _round_up(v, m):
    return (v + m - 1) // m * m


def _pad2d(a, rows, cols, dtype):
    a = a.astype(dtype)
    pr, pc = rows - a.shape[0], cols - a.shape[1]
    if pr or pc:
        a = jnp.pad(a, ((0, pr), (0, pc)))
    return a


@jax.jit
def mlp_forward(params, x):
    n, in_dim = x.shape
    num_layers = len(params)
    out_dim = params[-1]["w"].shape[1]

    n_pad = max(_round_up(n, 8), 8)
    dims = [in_dim] + [p["w"].shape[1] for p in params]
    dims_pad = [max(_round_up(d, 128), 128) for d in dims]

    inputs = [_pad2d(x, n_pad, dims_pad[0], jnp.float32)]
    flops = 0
    for li, p in enumerate(params):
        din_p, dout_p = dims_pad[li], dims_pad[li + 1]
        inputs.append(_pad2d(p["w"], din_p, dout_p, jnp.bfloat16))
        inputs.append(_pad2d(p["b"], 1, dout_p, jnp.float32))
        if li < num_layers - 1:
            inputs.append(_pad2d(p["gamma"], 1, dout_p, jnp.float32))
            inputs.append(_pad2d(p["beta"], 1, dout_p, jnp.float32))
        flops += 2 * n_pad * din_p * dout_p

    bytes_accessed = sum(int(a.size) * a.dtype.itemsize for a in inputs)
    bytes_accessed += n_pad * dims_pad[-1] * 4
    transcendentals = sum(dims_pad[1:num_layers])  # one rsqrt lane per hidden feature

    kernel = functools.partial(_fused_mlp_kernel, n, num_layers)
    out_padded = pl.pallas_call(
        kernel,
        out_shape=jax.ShapeDtypeStruct((n_pad, dims_pad[-1]), jnp.float32),
        in_specs=[pl.BlockSpec(memory_space=pltpu.VMEM)] * len(inputs),
        out_specs=pl.BlockSpec(memory_space=pltpu.VMEM),
        compiler_params=pltpu.CompilerParams(vmem_limit_bytes=32 * 1024 * 1024),
        cost_estimate=pl.CostEstimate(
            flops=flops,
            transcendentals=transcendentals,
            bytes_accessed=bytes_accessed,
        ),
    )(*inputs)

    return out_padded[:n, :out_dim]


# --------------------------------------------------------------------------------------
# Parameter init (mimics PyTorch nn.Linear defaults; BN gamma=1, beta=0) and references.
# --------------------------------------------------------------------------------------
def init_mlp_params(key, in_dim, hidden_dim, out_dim, num_layers):
    dims = [in_dim] + [hidden_dim] * (num_layers - 1) + [out_dim]
    params = []
    for li in range(num_layers):
        d_in, d_out = dims[li], dims[li + 1]
        key, kw, kb = jax.random.split(key, 3)
        bound = 1.0 / (d_in ** 0.5)
        w = jax.random.uniform(kw, (d_in, d_out), jnp.float32, -bound, bound)
        b = jax.random.uniform(kb, (1, d_out), jnp.float32, -bound, bound)
        layer = {"w": w, "b": b}
        if li < num_layers - 1:
            layer["gamma"] = jnp.ones((1, d_out), jnp.float32)
            layer["beta"] = jnp.zeros((1, d_out), jnp.float32)
        params.append(layer)
    return params


def mlp_reference(params, x):
    """Pure-JAX reference mirroring the kernel's numerics (bf16 matmul, f32 accumulate,
    training-mode BatchNorm1d with biased variance)."""
    h = x.astype(jnp.float32)
    for li in range(len(params) - 1):
        p = params[li]
        y = jnp.dot(h.astype(jnp.bfloat16), p["w"].astype(jnp.bfloat16),
                    preferred_element_type=jnp.float32) + p["b"]
        mean = jnp.mean(y, axis=0, keepdims=True)
        var = jnp.mean((y - mean) ** 2, axis=0, keepdims=True)
        y = (y - mean) * jax.lax.rsqrt(var + BN_EPS) * p["gamma"] + p["beta"]
        h = jnp.maximum(y, 0.0)
    p = params[-1]
    return jnp.dot(h.astype(jnp.bfloat16), p["w"].astype(jnp.bfloat16),
                   preferred_element_type=jnp.float32) + p["b"]


if __name__ == "__main__":
    key = jax.random.PRNGKey(0)
    batch, in_dim, hidden_dim, out_dim, num_layers = 8, 16, 32, 8, 3

    kx, kp = jax.random.split(key)
    x = jax.random.normal(kx, (batch, in_dim), jnp.float32)
    params = init_mlp_params(kp, in_dim, hidden_dim, out_dim, num_layers)

    out = mlp_forward(params, x)
    out = jax.block_until_ready(out)

    ref = mlp_reference(params, x)
    assert out.shape == (batch, out_dim)
    assert jnp.allclose(out, ref, atol=2e-2, rtol=2e-2), "mismatch vs reference"

    print("KERNEL_OK")
</pallas_src>

<mosaic_0001>
module attributes {stable_mosaic.version = 11 : i64} {
  func.func @_fused_mlp_kernel(%arg0: memref<8x128xf32, #tpu.memory_space<vmem>>, %arg1: memref<128x128xbf16, #tpu.memory_space<vmem>>, %arg2: memref<1x128xf32, #tpu.memory_space<vmem>>, %arg3: memref<1x128xf32, #tpu.memory_space<vmem>>, %arg4: memref<1x128xf32, #tpu.memory_space<vmem>>, %arg5: memref<128x128xbf16, #tpu.memory_space<vmem>>, %arg6: memref<1x128xf32, #tpu.memory_space<vmem>>, %arg7: memref<1x128xf32, #tpu.memory_space<vmem>>, %arg8: memref<1x128xf32, #tpu.memory_space<vmem>>, %arg9: memref<128x128xbf16, #tpu.memory_space<vmem>>, %arg10: memref<1x128xf32, #tpu.memory_space<vmem>>, %arg11: memref<8x128xf32, #tpu.memory_space<vmem>>) attributes {dimension_semantics = [], scalar_prefetch = 0 : i64, scratch_operands = 0 : i64, tpu.core_type = #tpu.core_type<tc>} {
    %c0 = arith.constant 0 : index
    %c0_0 = arith.constant 0 : index
    %0 = vector.load %arg0[%c0, %c0_0] : memref<8x128xf32, #tpu.memory_space<vmem>>, vector<8x128xf32>
    %1 = tpu.iota {dimensions = array<i32: 0>} : vector<8x1xi32>
    %c8_i32 = arith.constant 8 : i32
    %2 = vector.broadcast %c8_i32 : i32 to vector<8x1xi32>
    %3 = arith.cmpi slt, %1, %2 : vector<8x1xi32>
    %4 = arith.extui %3 : vector<8x1xi1> to vector<8x1xi32>
    %5 = arith.sitofp %4 : vector<8x1xi32> to vector<8x1xf32>
    %6 = arith.truncf %0 : vector<8x128xf32> to vector<8x128xbf16>
    %c0_1 = arith.constant 0 : index
    %c0_2 = arith.constant 0 : index
    %7 = vector.load %arg1[%c0_1, %c0_2] : memref<128x128xbf16, #tpu.memory_space<vmem>>, vector<128x128xbf16>
    %cst = arith.constant dense<0.000000e+00> : vector<8x128xf32>
    %8 = tpu.matmul %6, %7, %cst {dimension_numbers = #tpu.dot_dimension_numbers<[1], [0], [0], [1], [0, 0, 1, 1], [], []>} : vector<8x128xbf16>, vector<128x128xbf16>, vector<8x128xf32> -> vector<8x128xf32>
    %c0_3 = arith.constant 0 : index
    %c0_4 = arith.constant 0 : index
    %9 = vector.load %arg2[%c0_3, %c0_4] : memref<1x128xf32, #tpu.memory_space<vmem>>, vector<1x128xf32>
    %10 = vector.broadcast %9 : vector<1x128xf32> to vector<8x128xf32>
    %11 = arith.addf %8, %10 : vector<8x128xf32>
    %12 = vector.broadcast %5 : vector<8x1xf32> to vector<8x128xf32>
    %13 = arith.mulf %11, %12 : vector<8x128xf32>
    %cst_5 = arith.constant dense<0.000000e+00> : vector<128xf32>
    %14 = vector.multi_reduction <add>, %13, %cst_5 [0] : vector<8x128xf32> to vector<128xf32>
    %15 = vector.shape_cast %14 : vector<128xf32> to vector<1x128xf32>
    %16 = arith.mulf %13, %11 : vector<8x128xf32>
    %cst_6 = arith.constant dense<0.000000e+00> : vector<128xf32>
    %17 = vector.multi_reduction <add>, %16, %cst_6 [0] : vector<8x128xf32> to vector<128xf32>
    %18 = vector.shape_cast %17 : vector<128xf32> to vector<1x128xf32>
    %cst_7 = arith.constant 1.250000e-01 : f32
    %19 = vector.broadcast %cst_7 : f32 to vector<1x128xf32>
    %20 = arith.mulf %15, %19 : vector<1x128xf32>
    %cst_8 = arith.constant 1.250000e-01 : f32
    %21 = vector.broadcast %cst_8 : f32 to vector<1x128xf32>
    %22 = arith.mulf %18, %21 : vector<1x128xf32>
    %23 = arith.mulf %20, %20 : vector<1x128xf32>
    %24 = arith.subf %22, %23 : vector<1x128xf32>
    %cst_9 = arith.constant 0.000000e+00 : f32
    %25 = vector.broadcast %cst_9 : f32 to vector<1x128xf32>
    %26 = arith.maximumf %24, %25 : vector<1x128xf32>
    %27 = vector.broadcast %20 : vector<1x128xf32> to vector<8x128xf32>
    %28 = arith.subf %11, %27 : vector<8x128xf32>
    %cst_10 = arith.constant 9.99999974E-6 : f32
    %29 = vector.broadcast %cst_10 : f32 to vector<1x128xf32>
    %30 = arith.addf %26, %29 : vector<1x128xf32>
    %31 = math.rsqrt %30 : vector<1x128xf32>
    %32 = vector.broadcast %31 : vector<1x128xf32> to vector<8x128xf32>
    %33 = arith.mulf %28, %32 : vector<8x128xf32>
    %c0_11 = arith.constant 0 : index
    %c0_12 = arith.constant 0 : index
    %34 = vector.load %arg3[%c0_11, %c0_12] : memref<1x128xf32, #tpu.memory_space<vmem>>, vector<1x128xf32>
    %35 = vector.broadcast %34 : vector<1x128xf32> to vector<8x128xf32>
    %36 = arith.mulf %33, %35 : vector<8x128xf32>
    %c0_13 = arith.constant 0 : index
    %c0_14 = arith.constant 0 : index
    %37 = vector.load %arg4[%c0_13, %c0_14] : memref<1x128xf32, #tpu.memory_space<vmem>>, vector<1x128xf32>
    %38 = vector.broadcast %37 : vector<1x128xf32> to vector<8x128xf32>
    %39 = arith.addf %36, %38 : vector<8x128xf32>
    %cst_15 = arith.constant 0.000000e+00 : f32
    %40 = vector.broadcast %cst_15 : f32 to vector<8x128xf32>
    %41 = arith.maximumf %39, %40 : vector<8x128xf32>
    %42 = arith.truncf %41 : vector<8x128xf32> to vector<8x128xbf16>
    %c0_16 = arith.constant 0 : index
    %c0_17 = arith.constant 0 : index
    %43 = vector.load %arg5[%c0_16, %c0_17] : memref<128x128xbf16, #tpu.memory_space<vmem>>, vector<128x128xbf16>
    %cst_18 = arith.constant dense<0.000000e+00> : vector<8x128xf32>
    %44 = tpu.matmul %42, %43, %cst_18 {dimension_numbers = #tpu.dot_dimension_numbers<[1], [0], [0], [1], [0, 0, 1, 1], [], []>} : vector<8x128xbf16>, vector<128x128xbf16>, vector<8x128xf32> -> vector<8x128xf32>
    %c0_19 = arith.constant 0 : index
    %c0_20 = arith.constant 0 : index
    %45 = vector.load %arg6[%c0_19, %c0_20] : memref<1x128xf32, #tpu.memory_space<vmem>>, vector<1x128xf32>
    %46 = vector.broadcast %45 : vector<1x128xf32> to vector<8x128xf32>
    %47 = arith.addf %44, %46 : vector<8x128xf32>
    %48 = vector.broadcast %5 : vector<8x1xf32> to vector<8x128xf32>
    %49 = arith.mulf %47, %48 : vector<8x128xf32>
    %cst_21 = arith.constant dense<0.000000e+00> : vector<128xf32>
    %50 = vector.multi_reduction <add>, %49, %cst_21 [0] : vector<8x128xf32> to vector<128xf32>
    %51 = vector.shape_cast %50 : vector<128xf32> to vector<1x128xf32>
    %52 = arith.mulf %49, %47 : vector<8x128xf32>
    %cst_22 = arith.constant dense<0.000000e+00> : vector<128xf32>
    %53 = vector.multi_reduction <add>, %52, %cst_22 [0] : vector<8x128xf32> to vector<128xf32>
    %54 = vector.shape_cast %53 : vector<128xf32> to vector<1x128xf32>
    %cst_23 = arith.constant 1.250000e-01 : f32
    %55 = vector.broadcast %cst_23 : f32 to vector<1x128xf32>
    %56 = arith.mulf %51, %55 : vector<1x128xf32>
    %cst_24 = arith.constant 1.250000e-01 : f32
    %57 = vector.broadcast %cst_24 : f32 to vector<1x128xf32>
    %58 = arith.mulf %54, %57 : vector<1x128xf32>
    %59 = arith.mulf %56, %56 : vector<1x128xf32>
    %60 = arith.subf %58, %59 : vector<1x128xf32>
    %cst_25 = arith.constant 0.000000e+00 : f32
    %61 = vector.broadcast %cst_25 : f32 to vector<1x128xf32>
    %62 = arith.maximumf %60, %61 : vector<1x128xf32>
    %63 = vector.broadcast %56 : vector<1x128xf32> to vector<8x128xf32>
    %64 = arith.subf %47, %63 : vector<8x128xf32>
    %cst_26 = arith.constant 9.99999974E-6 : f32
    %65 = vector.broadcast %cst_26 : f32 to vector<1x128xf32>
    %66 = arith.addf %62, %65 : vector<1x128xf32>
    %67 = math.rsqrt %66 : vector<1x128xf32>
    %68 = vector.broadcast %67 : vector<1x128xf32> to vector<8x128xf32>
    %69 = arith.mulf %64, %68 : vector<8x128xf32>
    %c0_27 = arith.constant 0 : index
    %c0_28 = arith.constant 0 : index
    %70 = vector.load %arg7[%c0_27, %c0_28] : memref<1x128xf32, #tpu.memory_space<vmem>>, vector<1x128xf32>
    %71 = vector.broadcast %70 : vector<1x128xf32> to vector<8x128xf32>
    %72 = arith.mulf %69, %71 : vector<8x128xf32>
    %c0_29 = arith.constant 0 : index
    %c0_30 = arith.constant 0 : index
    %73 = vector.load %arg8[%c0_29, %c0_30] : memref<1x128xf32, #tpu.memory_space<vmem>>, vector<1x128xf32>
    %74 = vector.broadcast %73 : vector<1x128xf32> to vector<8x128xf32>
    %75 = arith.addf %72, %74 : vector<8x128xf32>
    %cst_31 = arith.constant 0.000000e+00 : f32
    %76 = vector.broadcast %cst_31 : f32 to vector<8x128xf32>
    %77 = arith.maximumf %75, %76 : vector<8x128xf32>
    %78 = arith.truncf %77 : vector<8x128xf32> to vector<8x128xbf16>
    %c0_32 = arith.constant 0 : index
    %c0_33 = arith.constant 0 : index
    %79 = vector.load %arg9[%c0_32, %c0_33] : memref<128x128xbf16, #tpu.memory_space<vmem>>, vector<128x128xbf16>
    %cst_34 = arith.constant dense<0.000000e+00> : vector<8x128xf32>
    %80 = tpu.matmul %78, %79, %cst_34 {dimension_numbers = #tpu.dot_dimension_numbers<[1], [0], [0], [1], [0, 0, 1, 1], [], []>} : vector<8x128xbf16>, vector<128x128xbf16>, vector<8x128xf32> -> vector<8x128xf32>
    %c0_35 = arith.constant 0 : index
    %c0_36 = arith.constant 0 : index
    %81 = vector.load %arg10[%c0_35, %c0_36] : memref<1x128xf32, #tpu.memory_space<vmem>>, vector<1x128xf32>
    %82 = vector.broadcast %81 : vector<1x128xf32> to vector<8x128xf32>
    %83 = arith.addf %80, %82 : vector<8x128xf32>
    %c0_37 = arith.constant 0 : index
    %c0_38 = arith.constant 0 : index
    %84 = vector.load %arg11[%c0_37, %c0_38] : memref<8x128xf32, #tpu.memory_space<vmem>>, vector<8x128xf32>
    tpu.vector_store %arg11[%c0_37, %c0_38], %83 {strides = array<i32>} : memref<8x128xf32, #tpu.memory_space<vmem>>, vector<8x128xf32>,
    return
  }
}

</mosaic_0001>

<bundles_post_ra>
// kernel: mlp_forward.1
= control target key start
LH: loop header
LB: loop body
LE: loop exit
PB: predicated region body
PF: predicated region fallthrough
CT: control target
= control target key end

     0   :  { %s712_s0 = inlined_call_operand.vmem [shape: f32[8,128], index: 0, kind: input, shape index: {}]   ;;  %s713_s1 = inlined_call_operand.vmem [shape: bf16[128,128], index: 1, kind: input, shape index: {}]   ;;  %s714_s2 = inlined_call_operand.vmem [shape: f32[1,128], index: 2, kind: input, shape index: {}]   ;;  %s715_s3 = inlined_call_operand.vmem [shape: f32[1,128], index: 3, kind: input, shape index: {}]   ;;  %s716_s4 = inlined_call_operand.vmem [shape: f32[1,128], index: 4, kind: input, shape index: {}]   ;;  %s717_s5 = inlined_call_operand.vmem [shape: bf16[128,128], index: 5, kind: input, shape index: {}]   ;;  %s718_s6 = inlined_call_operand.vmem [shape: f32[1,128], index: 6, kind: input, shape index: {}]   ;;  %s719_s7 = inlined_call_operand.vmem [shape: f32[1,128], index: 7, kind: input, shape index: {}]   ;;  %s720_s8 = inlined_call_operand.vmem [shape: f32[1,128], index: 8, kind: input, shape index: {}]   ;;  %s721_s9 = inlined_call_operand.vmem [shape: bf16[128,128], index: 9, kind: input, shape index: {}]   ;;  %s722_s10 = inlined_call_operand.vmem [shape: f32[1,128], index: 10, kind: input, shape index: {}]   ;;  %s723_s11 = inlined_call_operand.hbm [shape: f32[8,128], index: 11, kind: output, shape index: {}]  }
   0x1   :  { %v497_v0 = vld [vmem:[%s713_s1 + $0x38] sm:$0xff]  ;;  %v496_v1 = vld [vmem:[%s713_s1 + $0x30] sm:$0xff] }
   0x2   :  { %114 = vmatpush.bf16.msra.mxu0 %v497_v0 }
   0x3   :  { %16 = vsyncpa [#allocation3], 0  ;;  %v495_v2 = vld [vmem:[%s713_s1 + $0x28] sm:$0xff]  ;;  %v494_v3 = vld [vmem:[%s713_s1 + $0x20] sm:$0xff]  ;;  %s552_s12 = smov [#allocation2]  }
   0x4   :  { %v493_v4 = vld [vmem:[%s713_s1 + $0x18] sm:$0xff]  ;;  %v492_v5 = vld [vmem:[%s713_s1 + $0x10] sm:$0xff]  ;;  %v491_v6 = vld [vmem:[%s713_s1 + $0x8] sm:$0xff]  ;;  %s383_s13 = sshll.u32 %s552_s12, 4  ;;  %s384_s13 = int_to_ptr.vmem [resolvable:$true] %s383_s13 }
   0x5   :  { %v490_v7 = vld [vmem:[%s713_s1] sm:$0xff]  ;;  %v505_v10 = vld [vmem:[%s717_s5 + $0x38] sm:$0xff]  ;;  %v504_v11 = vld [vmem:[%s717_s5 + $0x30] sm:$0xff] }
   0x6   :  { %115 = vmatpush.bf16.msra.mxu0 %v496_v1  ;;  %v39_v8 = vld [vmem:[%s712_s0] sm:$0xff]  ;;  %239 = vmatpush.bf16.msra.mxu1 %v505_v10  ;;  %v503_v12 = vld [vmem:[%s717_s5 + $0x28] sm:$0xff]  ;;  %v501_v15 = vld [vmem:[%s717_s5 + $0x18] sm:$0xff] }
   0x7   :  { %v45_v9 = vpack.c.bf16 %v39_v8, %v39_v8  ;;  %v502_v13 = vld [vmem:[%s717_s5 + $0x20] sm:$0xff]  ;;  %v500_v20 = vld [vmem:[%s717_s5 + $0x10] sm:$0xff]  ;;  %v499_v25 = vld [vmem:[%s717_s5 + $0x8] sm:$0xff] }
   0x8   :  { %v515_v14 = vld [vmem:[%s714_s2] ss:$0 sm:$0xff]  ;;  %v513_v56 = vld [vmem:[%s721_s9 + $0x38] sm:$0xff]  ;;  %v512_v57 = vld [vmem:[%s721_s9 + $0x30] sm:$0xff] }
   0x9   :  { %v498_v31 = vld [vmem:[%s717_s5] sm:$0xff]  ;;  %364 = vmatpush.bf16.msra.mxu2 %v513_v56  ;;  %v511_v58 = vld [vmem:[%s721_s9 + $0x28] sm:$0xff]  ;;  %v509_v61 = vld [vmem:[%s721_s9 + $0x18] sm:$0xff] }
   0xa   :  { %116 = vmatpush.bf16.msra.mxu0 %v495_v2  ;;  %240 = vmatpush.bf16.msra.mxu1 %v504_v11  ;;  %v516_v48 = vld [vmem:[%s715_s3] ss:$0 sm:$0xff]  ;;  %v508_v2 = vld [vmem:[%s721_s9 + $0x10] sm:$0xff] }
   0xb   :  { %v517_v51 = vld [vmem:[%s716_s4] ss:$0 sm:$0xff] }
   0xc   :  { %v510_v59 = vld [vmem:[%s721_s9 + $0x20] sm:$0xff] }
   0xd   :  { %365 = vmatpush.bf16.msra.mxu2 %v512_v57  ;;  %v518_v60 = vld [vmem:[%s718_s6] ss:$0 sm:$0xff] }
   0xe   :  { %117 = vmatpush.bf16.msra.mxu0 %v494_v3  ;;  %241 = vmatpush.bf16.msra.mxu1 %v503_v12 }
  0x11   :  { %366 = vmatpush.bf16.msra.mxu2 %v511_v58 }
  0x12   :  { %118 = vmatpush.bf16.msra.mxu0 %v493_v4  ;;  %242 = vmatpush.bf16.msra.mxu1 %v502_v13  ;;  %v506_v13 = vld [vmem:[%s721_s9] sm:$0xff] }
  0x15   :  { %367 = vmatpush.bf16.msra.mxu2 %v510_v59 }
  0x16   :  { %119 = vmatpush.bf16.msra.mxu0 %v492_v5  ;;  %243 = vmatpush.bf16.msra.mxu1 %v501_v15 }
  0x19   :  { %368 = vmatpush.bf16.msra.mxu2 %v509_v61 }
  0x1a   :  { %120 = vmatpush.bf16.msra.mxu0 %v491_v6  ;;  %244 = vmatpush.bf16.msra.mxu1 %v500_v20 }
  0x1d   :  { %369 = vmatpush.bf16.msra.mxu2 %v508_v2 }
  0x1e   :  { %121 = vmatpush.bf16.msra.mxu0 %v490_v7  ;;  %245 = vmatpush.bf16.msra.mxu1 %v499_v25  ;;  %v507_v7 = vld [vmem:[%s721_s9 + $0x8] sm:$0xff] }
  0x21   :  { %122 = vmatmul.bf16.vlgmr.msra.gmra.mxu0 %v45_v9  ;;  %370 = vmatpush.bf16.msra.mxu2 %v507_v7 }
  0x22   :  { %246 = vmatpush.bf16.msra.mxu1 %v498_v31 }
  0x25   :  { %371 = vmatpush.bf16.msra.mxu2 %v506_v13 }
  0x9e   :  { %v123_v16 = vpop.f32.mrf.mxu0 }
  0x9f   :  { %v124_v17 = vadd.f32 %v515_v14, %v123_v16 }
  0xa1   :  { %v128_v18 = vrot.slane %v124_v17, 4  ;;  %v134_v19 = vmul.f32 %v124_v17, %v124_v17 }
  0xa3   :  { %v129_v21 = vadd.f32 %v128_v18, %v124_v17  ;;  %v135_v22 = vrot.slane %v134_v19, 4 }
  0xa5   :  { %v130_v23 = vrot.slane %v129_v21, 2  ;;  %v136_v24 = vadd.f32 %v135_v22, %v134_v19 }
  0xa6   :  { %v125_v26 = vpop.f32.mrf.mxu0 }
  0xa7   :  { %v131_v27 = vadd.f32 %v130_v23, %v129_v21  ;;  %v137_v28 = vrot.slane %v136_v24, 2 }
  0xa9   :  { %v132_v29 = vrot.slane %v131_v27, 1  ;;  %v138_v30 = vadd.f32 %v137_v28, %v136_v24 }
  0xab   :  { %v139_v32 = vrot.slane %v138_v30, 1  ;;  %v133_v33 = vadd.f32 %v132_v29, %v131_v27 }
  0xad   :  { %v140_v34 = vadd.f32 %v139_v32, %v138_v30  ;;  %v141_v35 = vmul.f32 0.125, %v133_v33  ;;  %v519_v30 = vld [vmem:[%s719_s7] ss:$0 sm:$0xff]  ;;  %s385_s7 = sshll.u32 %s723_s11, 4  ;;  %s386_s7 = int_to_ptr.hbm [resolvable:$true] %s385_s7 }
  0xae   :  { %v520_v33 = vld [vmem:[%s720_s8] ss:$0 sm:$0xff] }
  0xaf   :  { %v142_v36 = vmul.f32 0.125, %v140_v34  ;;  %v143_v37 = vmul.f32 %v141_v35, %v141_v35  ;;  %v146_v47 = vsub.f32 %v124_v17, %v141_v35 }
  0xb1   :  { %v144_v38 = vsub.f32 %v142_v36, %v143_v37 }
  0xb3   :  { %v145_v39 = vmax.f32 %v144_v38, 0.0  ;;  %v521_v38 = vld [vmem:[%s722_s10] ss:$0 sm:$0xff] }
  0xb5   :  { %v147_v40 = vadd.f32 1e-05, %v145_v39 }
  0xb7   :  { %522 = vrsqrt.f32 %v147_v40  ;;  %vm154_vm1 = vweird.f32 %v147_v40 }
  0xbd   :  { %v523_v41 = vpop.eup %522 }
  0xbe   :  { %v149_v42 = vmul.f32 %v523_v41, %v147_v40  ;;  %vm155_vm0 = vweird.f32 %v523_v41 }
  0xbf   :  { %vm156_vm2 = vmor %vm154_vm1, %vm155_vm0 }
  0xc0   :  { %v150_v43 = vmul.f32 %v523_v41, %v149_v42 }
  0xc2   :  { %v151_v44 = vmul.f32 0.5, %v150_v43 }
  0xc4   :  { %v152_v45 = vsub.f32 1.5, %v151_v44 }
  0xc6   :  { %v153_v46 = vmul.f32 %v523_v41, %v152_v45 }
  0xc8   :  { %v157_v49 = vsel %vm156_vm2, %v523_v41, %v153_v46 }
  0xc9   :  { %v158_v50 = vmul.f32 %v157_v49, %v146_v47 }
  0xcb   :  { %v163_v52 = vmul.f32 %v516_v48, %v158_v50 }
  0xcd   :  { %v168_v53 = vadd.f32 %v517_v51, %v163_v52 }
  0xcf   :  { %v169_v54 = vmax.f32 %v168_v53, 0.0 }
  0xd1   :  { %v170_v55 = vpack.c.bf16 %v169_v54, %v169_v54 }
  0xd3   :  { %247 = vmatmul.bf16.vlgmr.msra.gmra.mxu1 %v170_v55 }
 0x150   :  { %v248_v62 = vpop.f32.mrf.mxu1 }
 0x151   :  { %v249_v63 = vadd.f32 %v518_v60, %v248_v62 }
 0x153   :  { %v253_v0 = vrot.slane %v249_v63, 4  ;;  %v259_v1 = vmul.f32 %v249_v63, %v249_v63 }
 0x155   :  { %v254_v3 = vadd.f32 %v253_v0, %v249_v63  ;;  %v260_v4 = vrot.slane %v259_v1, 4 }
 0x157   :  { %v255_v5 = vrot.slane %v254_v3, 2  ;;  %v261_v6 = vadd.f32 %v260_v4, %v259_v1 }
 0x158   :  { %v250_v8 = vpop.f32.mrf.mxu1 }
 0x159   :  { %v256_v9 = vadd.f32 %v255_v5, %v254_v3  ;;  %v262_v10 = vrot.slane %v261_v6, 2 }
 0x15b   :  { %v257_v11 = vrot.slane %v256_v9, 1  ;;  %v263_v12 = vadd.f32 %v262_v10, %v261_v6 }
 0x15d   :  { %v264_v14 = vrot.slane %v263_v12, 1  ;;  %v258_v15 = vadd.f32 %v257_v11, %v256_v9 }
 0x15f   :  { %v265_v16 = vadd.f32 %v264_v14, %v263_v12  ;;  %v266_v17 = vmul.f32 0.125, %v258_v15 }
 0x161   :  { %v267_v18 = vmul.f32 0.125, %v265_v16  ;;  %v268_v19 = vmul.f32 %v266_v17, %v266_v17  ;;  %v271_v29 = vsub.f32 %v249_v63, %v266_v17 }
 0x163   :  { %v269_v20 = vsub.f32 %v267_v18, %v268_v19 }
 0x165   :  { %v270_v21 = vmax.f32 %v269_v20, 0.0 }
 0x167   :  { %v272_v22 = vadd.f32 1e-05, %v270_v21 }
 0x169   :  { %524 = vrsqrt.f32 %v272_v22  ;;  %vm279_vm4 = vweird.f32 %v272_v22 }
 0x16f   :  { %v525_v23 = vpop.eup %524 }
 0x170   :  { %v274_v24 = vmul.f32 %v525_v23, %v272_v22  ;;  %vm280_vm3 = vweird.f32 %v525_v23 }
 0x171   :  { %vm281_vm5 = vmor %vm279_vm4, %vm280_vm3 }
 0x172   :  { %v275_v25 = vmul.f32 %v525_v23, %v274_v24 }
 0x174   :  { %v276_v26 = vmul.f32 0.5, %v275_v25 }
 0x176   :  { %v277_v27 = vsub.f32 1.5, %v276_v26 }
 0x178   :  { %v278_v28 = vmul.f32 %v525_v23, %v277_v27 }
 0x17a   :  { %v282_v31 = vsel %vm281_vm5, %v525_v23, %v278_v28 }
 0x17b   :  { %v283_v32 = vmul.f32 %v282_v31, %v271_v29 }
 0x17d   :  { %v288_v34 = vmul.f32 %v519_v30, %v283_v32 }
 0x17f   :  { %v293_v35 = vadd.f32 %v520_v33, %v288_v34 }
 0x181   :  { %v294_v36 = vmax.f32 %v293_v35, 0.0 }
 0x183   :  { %v295_v37 = vpack.c.bf16 %v294_v36, %v294_v36 }
 0x185   :  { %372 = vmatmul.bf16.vlgmr.msra.gmra.mxu2 %v295_v37 }
 0x208   :  { %v373_v39 = vpop.f32.mrf.mxu2 }
 0x209   :  { %v374_v40 = vadd.f32 %v521_v38, %v373_v39 }
 0x20b   :  { %377 = vst [vmem:[#allocation2] sm:$0xff] %v374_v40 }
 0x20c   :  { %388 = dma.vmem_to_hbm [thread:$0]  %s384_s13, 128, %s386_s7, [#allocation3]  }
 0x210   :  { %v375_v41 = vpop.f32.mrf.mxu2 }
 0x211   :  { %550 = dma.done.wait [#allocation3], 128  }
 0x212   :  { %551 = vsyncadd [#allocation3], 4294967168 }
 0x213   :  { %393 = vsyncpa [#allocation3], 1 }

</bundles_post_ra>
